<compile_context>
chip_gen: v7x
topology: tpu7x:2x2x1
jax: 0.10.0
libtpu: 0.0.40
codegen_flags: <defaults>
</compile_context>

<pallas_src>
import functools
import math

import jax
import jax.numpy as jnp
import numpy as np
from jax import lax
from jax.experimental import pallas as pl
from jax.experimental.pallas import tpu as pltpu

# Distinct sentinels so padded rows and padded columns can never label-match each other
# (padded rows are additionally dropped in finalize; padded cols never match real labels).
_ROW_SENTINEL = np.iinfo(np.int32).min
_COL_SENTINEL = np.iinfo(np.int32).min + 1
_NEG_BIG = -1e30            # finite "-inf" for excluded logits (keeps exp/select NaN-free)

_VMEM_BUDGET = 40 * 1024 * 1024   # conservative against v7x's 64 MiB physical VMEM
_VMEM_LIMIT_CAP = 48 * 1024 * 1024


def _round_up(x, m):
    return (x + m - 1) // m * m


def _supcon_kernel(fr_ref, fc_ref, lr_ref, lc_ref, out_ref,
                   m_sc, l_sc, sp_sc, np_sc, *,
                   row_tile, col_tile, n_true, n_cols_pad, cols_resident):
    i = pl.program_id(0)          # row-tile index ("parallel")
    k = pl.program_id(1)          # col-tile index (reduction, "arbitrary")
    nk = pl.num_programs(1)
    n_chunks = col_tile // 128

    @pl.when(k == 0)
    def _init():
        m_sc[...] = jnp.full(m_sc.shape, -jnp.inf, jnp.float32)
        l_sc[...] = jnp.zeros(l_sc.shape, jnp.float32)
        sp_sc[...] = jnp.zeros(sp_sc.shape, jnp.float32)
        np_sc[...] = jnp.zeros(np_sc.shape, jnp.float32)

    if cols_resident:
        # Full contrast matrix is VMEM-resident (DMA'd once); slice the current tile.
        col_start = pl.multiple_of(k * col_tile, col_tile)
        fc = fc_ref[pl.ds(col_start, col_tile), :]
    else:
        fc = fc_ref[...]

    # anchor . contrast^T; both operands already carry 1/sqrt(T); bf16 MXU, f32 accum.
    # (A.B^T contraction is the standard flash-attention pattern; pre-transpose the
    #  contrast operand in the wrapper only if the MLIR shows a per-tile relayout.)
    s = lax.dot_general(fr_ref[...], fc, (((1,), (1,)), ((), ())),
                        preferred_element_type=jnp.float32)      # [TR, TC] f32

    if n_cols_pad > n_true:
        # Compiled in only when padded contrast columns exist: push them to -BIG so they
        # drop out of the softmax denominator (they can never be positives of real rows).
        col_ids = k * col_tile + lax.broadcasted_iota(jnp.int32, (1, col_tile), 1)
        s = s + jnp.where(col_ids >= n_true, _NEG_BIG, 0.0)

    # Hoist the lane-broadcast of the row labels once per grid step (not per chunk).
    lr_b = jnp.broadcast_to(lr_ref[...], (row_tile, 128))        # [TR, 128] int32
    lc = lc_ref[...]                                             # [1, TC]  int32

    def accumulate(diag_delta):
        # diag_delta: None (off-diagonal tile) or [TR,128] int32 with
        # row_idx - lane_idx + (i*row_tile - k*col_tile); diagonal of chunk c is
        # where diag_delta == c*128.
        m_prev = m_sc[...]
        m_new = m_prev
        for c in range(n_chunks):                 # lane-wise running max (VALU only)
            m_new = jnp.maximum(m_new, s[:, c * 128:(c + 1) * 128])
        alpha = jnp.exp(m_prev - m_new)
        l_acc = l_sc[...] * alpha
        sp_acc = sp_sc[...]
        np_acc = np_sc[...]
        for c in range(n_chunks):
            chunk = s[:, c * 128:(c + 1) * 128]
            eq = lr_b == lc[:, c * 128:(c + 1) * 128]
            if diag_delta is not None:
                is_diag = diag_delta == (c * 128)
                chunk = jnp.where(is_diag, _NEG_BIG, chunk)
                eq = jnp.logical_and(eq, jnp.logical_not(is_diag))
            l_acc = l_acc + jnp.exp(chunk - m_new)                 # EUP
            sp_acc = sp_acc + jnp.where(eq, chunk, 0.0)            # exact sums: no rescale
            np_acc = np_acc + jnp.where(eq, 1.0, 0.0)
        m_sc[...] = m_new
        l_sc[...] = l_acc
        sp_sc[...] = sp_acc
        np_sc[...] = np_acc

    # Only tiles intersecting the global diagonal pay for self-contrast masking.
    overlaps = jnp.logical_and(i * row_tile < (k + 1) * col_tile,
                               k * col_tile < (i + 1) * row_tile)

    @pl.when(overlaps)
    def _diag_tile():
        row_io = lax.broadcasted_iota(jnp.int32, (row_tile, 128), 0)
        lane_io = lax.broadcasted_iota(jnp.int32, (row_tile, 128), 1)
        accumulate(row_io - lane_io + (i * row_tile - k * col_tile))

    @pl.when(jnp.logical_not(overlaps))
    def _off_diag_tile():
        accumulate(None)

    @pl.when(k == nk - 1)
    def _finalize():
        # Collapse the 128 lane-accumulators; the only cross-lane XLU work per row tile.
        m_lane = m_sc[...]
        m_row = jnp.max(m_lane, axis=1, keepdims=True)                      # [TR,1]
        l_row = jnp.sum(l_sc[...] * jnp.exp(m_lane - m_row), axis=1, keepdims=True)
        sp_row = jnp.sum(sp_sc[...], axis=1, keepdims=True)
        np_row = jnp.sum(np_sc[...], axis=1, keepdims=True)
        log_z = m_row + jnp.log(l_row)           # log softmax denominator
        # sum_j pos*log_prob = sum_j pos*logits - n_pos * log_z
        mean_lp = (sp_row - np_row * log_z) / jnp.maximum(np_row, 1.0)
        # drop padded rows; rows with zero positives contribute 0 (reference yields NaN).
        row_idx = i * row_tile + lax.broadcasted_iota(jnp.int32, (row_tile, 1), 0)
        valid = jnp.logical_and(np_row > 0.0, row_idx < n_true)
        mean_lp = jnp.where(valid, mean_lp, 0.0)                             # [TR,1]
        tile_sum = jnp.sum(mean_lp, axis=0, keepdims=True)                   # [1,1]
        out_ref[...] = jnp.broadcast_to(tile_sum, out_ref.shape)             # lane-dense


def supcon_loss(features, labels=None, mask=None, temperature=0.07,
                contrast_mode="all", base_temperature=0.07,
                *, row_tile=512, col_tile=1024, col_resident=None):
    """JAX/Pallas equivalent of SupConLoss.forward (labels / SimCLR paths)."""
    if features.ndim < 3:
        raise ValueError("`features` needs to be [bsz, n_views, ...], "
                         "at least 3 dimensions are required")
    if features.ndim > 3:
        features = features.reshape(features.shape[0], features.shape[1], -1)
    bsz, n_views, dim = features.shape

    if labels is not None and mask is not None:
        raise ValueError("Cannot define both `labels` and `mask`")
    if mask is not None:
        # TODO(synk): arbitrary user-provided [bsz, bsz] masks (possibly asymmetric)
        # are not expressible as a label-equality compare in-kernel.
        raise NotImplementedError("explicit `mask` path not implemented")
    if labels is None:
        labels = jnp.arange(bsz, dtype=jnp.int32)      # SimCLR: mask = eye(bsz)
    else:
        labels = jnp.asarray(labels).reshape(-1).astype(jnp.int32)
        if labels.shape[0] != bsz:
            raise ValueError("Num of labels does not match num of features")

    if contrast_mode == "one":
        # TODO(synk): 'one' mode needs a rectangular anchor/contrast matmul.
        raise NotImplementedError("contrast_mode='one' not implemented")
    if contrast_mode != "all":
        raise ValueError(f"Unknown mode: {contrast_mode}")

    if row_tile % 8 or col_tile % 128:
        raise ValueError("row_tile must be a multiple of 8, col_tile of 128")

    n = n_views * bsz
    # Bound padding waste for small N; cap row_tile at ~N/2 so grid_r >= 2 (v7x megacore).
    col_tile = min(col_tile, _round_up(n, 128))
    row_tile = min(row_tile, max(8, _round_up((n + 1) // 2, 8)))
    n_rows_pad = _round_up(n, row_tile)        # row and column padding are decoupled
    n_cols_pad = _round_up(n, col_tile)
    n_arr = max(n_rows_pad, n_cols_pad)
    d_pad = _round_up(dim, 128)                # never pad D beyond 128-multiples
    grid_r = n_rows_pad // row_tile
    grid_c = n_cols_pad // col_tile

    # contrast_feature = cat(unbind(features, dim=1), dim=0) -> view-major [N, D]
    cf = jnp.transpose(features, (1, 0, 2)).reshape(n, dim).astype(jnp.float32)

    # Single deduplicated operand: fold 1/sqrt(T) once; used for rows AND columns.
    scale = 1.0 / math.sqrt(float(temperature))
    feat = jnp.pad((cf * scale).astype(jnp.bfloat16),
                   ((0, n_arr - n), (0, d_pad - dim)))

    lab = jnp.tile(labels, n_views)                                  # [N]
    lab_row = jnp.pad(lab, (0, n_rows_pad - n),
                      constant_values=_ROW_SENTINEL).reshape(n_rows_pad, 1)
    lab_col = jnp.pad(lab, (0, n_cols_pad - n),
                      constant_values=_COL_SENTINEL).reshape(1, n_cols_pad)

    # ---- VMEM budget / column residency -------------------------------------------
    bytes_rows = 2 * row_tile * d_pad * 2            # double-buffered bf16 row blocks
    bytes_col_res = 2 * n_cols_pad * d_pad * 2       # resident contrast block (x2 safety)
    bytes_col_tiled = 2 * col_tile * d_pad * 2
    bytes_scratch = 4 * row_tile * 128 * 4
    bytes_inter = 3 * row_tile * col_tile * 4        # s tile + temporaries (f32)
    fixed = bytes_rows + bytes_scratch + bytes_inter + (1 << 20)
    if col_resident is None:
        col_resident = fixed + bytes_col_res <= _VMEM_BUDGET
    est = fixed + (bytes_col_res if col_resident else bytes_col_tiled)
    vmem_limit = int(min(max(est + (8 << 20), 32 << 20), _VMEM_LIMIT_CAP))

    if col_resident:
        col_spec = pl.BlockSpec((n_cols_pad, d_pad), lambda i, k: (0, 0))
    else:
        col_spec = pl.BlockSpec((col_tile, d_pad), lambda i, k: (k, 0))

    kernel = functools.partial(_supcon_kernel, row_tile=row_tile, col_tile=col_tile,
                               n_true=n, n_cols_pad=n_cols_pad,
                               cols_resident=col_resident)

    cost = pl.CostEstimate(
        flops=2 * n_rows_pad * n_cols_pad * d_pad,
        transcendentals=n_rows_pad * n_cols_pad + 2 * n_rows_pad * 128,
        bytes_accessed=(n_arr * d_pad * 2) * (1 + (1 if col_resident else grid_r))
        + (n_rows_pad + n_cols_pad) * 4 + grid_r * 8 * 128 * 4,
    )

    partial_sums = pl.pallas_call(
        kernel,
        out_shape=jax.ShapeDtypeStruct((grid_r, 8, 128), jnp.float32),
        grid_spec=pltpu.PrefetchScalarGridSpec(
            num_scalar_prefetch=0,
            grid=(grid_r, grid_c),
            in_specs=[
                pl.BlockSpec((row_tile, d_pad), lambda i, k: (i, 0)),   # anchor rows
                col_spec,                                               # contrast cols
                pl.BlockSpec((row_tile, 1), lambda i, k: (i, 0)),       # row labels
                pl.BlockSpec((1, col_tile), lambda i, k: (0, k)),       # col labels
            ],
            out_specs=pl.BlockSpec((1, 8, 128), lambda i, k: (i, 0, 0)),
            scratch_shapes=[pltpu.VMEM((row_tile, 128), jnp.float32)] * 4,
        ),
        compiler_params=pltpu.CompilerParams(
            dimension_semantics=("parallel", "arbitrary"),
            vmem_limit_bytes=vmem_limit),
        cost_estimate=cost,
    )(feat, feat, lab_row, lab_col)

    total = jnp.sum(partial_sums[:, 0, 0])
    return -(temperature / base_temperature) * total / n


def _supcon_loss_ref(features, labels, temperature=0.07, base_temperature=0.07):
    """Pure-JAX f32 reference mirroring the PyTorch code (contrast_mode='all')."""
    bsz, n_views, dim = features.shape
    mask = (labels.reshape(-1, 1) == labels.reshape(1, -1)).astype(jnp.float32)
    cf = jnp.transpose(features, (1, 0, 2)).reshape(n_views * bsz, dim)
    adc = (cf @ cf.T) / temperature
    logits = adc - jnp.max(adc, axis=1, keepdims=True)
    n = n_views * bsz
    mask = jnp.tile(mask, (n_views, n_views))
    logits_mask = 1.0 - jnp.eye(n, dtype=jnp.float32)
    mask = mask * logits_mask
    exp_logits = jnp.exp(logits) * logits_mask
    log_prob = logits - jnp.log(jnp.sum(exp_logits, axis=1, keepdims=True))
    mlpp = jnp.sum(mask * log_prob, axis=1) / jnp.sum(mask, axis=1)
    return jnp.mean(-(temperature / base_temperature) * mlpp)


if __name__ == "__main__":
    key = jax.random.PRNGKey(0)
    k1, k2, k3, k4, k5, k6 = jax.random.split(key, 6)

    # [bsz, n_views, dim] features, L2-normalized (standard SupCon usage).
    bsz, n_views, dim = 8, 2, 32
    feats = jax.random.normal(k1, (bsz, n_views, dim), dtype=jnp.float32)
    feats = feats / jnp.linalg.norm(feats, axis=-1, keepdims=True)
    labels = jax.random.randint(k2, (bsz,), 0, 3)

    loss = jax.block_until_ready(supcon_loss(feats, labels=labels))
    ref = jax.block_until_ready(_supcon_loss_ref(feats, labels))
    np.testing.assert_allclose(np.asarray(loss), np.asarray(ref), rtol=2e-2, atol=2e-2)

    # SimCLR path (labels=None -> identity mask == labels=arange(bsz)); same shapes,
    # so this re-uses the compiled kernel.
    loss_simclr = jax.block_until_ready(supcon_loss(feats))
    ref_simclr = jax.block_until_ready(
        _supcon_loss_ref(feats, jnp.arange(bsz, dtype=jnp.int32)))
    np.testing.assert_allclose(np.asarray(loss_simclr), np.asarray(ref_simclr),
                               rtol=2e-2, atol=2e-2)

    # Multi row/col tiles, unequal tiles, diag vs off-diag paths, padded columns,
    # online accumulation, resident contrast operand.
    bsz2, n_views2, dim2 = 96, 2, 48
    feats2 = jax.random.normal(k3, (bsz2, n_views2, dim2), dtype=jnp.float32)
    feats2 = feats2 / jnp.linalg.norm(feats2, axis=-1, keepdims=True)
    labels2 = jax.random.randint(k4, (bsz2,), 0, 10)
    loss2 = jax.block_until_ready(
        supcon_loss(feats2, labels=labels2, row_tile=128, col_tile=128))
    ref2 = jax.block_until_ready(_supcon_loss_ref(feats2, labels2))
    np.testing.assert_allclose(np.asarray(loss2), np.asarray(ref2), rtol=2e-2, atol=2e-2)

    # Same data through the non-resident (tiled column DMA) fallback path.
    loss3 = jax.block_until_ready(
        supcon_loss(feats2, labels=labels2, col_resident=False))
    np.testing.assert_allclose(np.asarray(loss3), np.asarray(ref2), rtol=2e-2, atol=2e-2)

    # Exact-fit case: no padded rows or columns (exercises the no-bias static branch).
    bsz3, n_views3, dim3 = 64, 2, 32
    feats3 = jax.random.normal(k5, (bsz3, n_views3, dim3), dtype=jnp.float32)
    feats3 = feats3 / jnp.linalg.norm(feats3, axis=-1, keepdims=True)
    labels3 = jax.random.randint(k6, (bsz3,), 0, 5)
    loss4 = jax.block_until_ready(supcon_loss(feats3, labels=labels3))
    ref4 = jax.block_until_ready(_supcon_loss_ref(feats3, labels3))
    np.testing.assert_allclose(np.asarray(loss4), np.asarray(ref4), rtol=2e-2, atol=2e-2)

    print("KERNEL_OK")
</pallas_src>

<mosaic_0001>
module attributes {stable_mosaic.version = 11 : i64} {
  func.func @_supcon_kernel(%arg0: i32, %arg1: i32, %arg2: memref<8x128xbf16, #tpu.memory_space<vmem>>, %arg3: memref<128x128xbf16, #tpu.memory_space<vmem>>, %arg4: memref<8x1xi32, #tpu.memory_space<vmem>>, %arg5: memref<1x128xi32, #tpu.memory_space<vmem>>, %arg6: memref<1x8x128xf32, #tpu.memory_space<vmem>>, %arg7: memref<8x128xf32, #tpu.memory_space<vmem>>, %arg8: memref<8x128xf32, #tpu.memory_space<vmem>>, %arg9: memref<8x128xf32, #tpu.memory_space<vmem>>, %arg10: memref<8x128xf32, #tpu.memory_space<vmem>>) attributes {dimension_semantics = [#tpu.dimension_semantics<parallel>, #tpu.dimension_semantics<arbitrary>], iteration_bounds = array<i64: 2, 1>, scalar_prefetch = 0 : i64, scratch_operands = 4 : i64, tpu.core_type = #tpu.core_type<tc>, window_params = [{transform_indices = @transform_0, window_bounds = array<i64: 8, 128>}, {pipeline_mode = #tpu.pipeline_mode<synchronous>, transform_indices = @transform_1, window_bounds = array<i64: 128, 128>}, {transform_indices = @transform_2, window_bounds = array<i64: 8, 1>}, {transform_indices = @transform_3, window_bounds = array<i64: 1, 128>}, {transform_indices = @transform_4, window_bounds = array<i64: 1, 8, 128>}]} {
    %c0_i32 = arith.constant 0 : i32
    %0 = arith.cmpi eq, %arg1, %c0_i32 : i32
    %1 = arith.extui %0 : i1 to i32
    %c0_i32_0 = arith.constant 0 : i32
    %2 = arith.cmpi ne, %1, %c0_i32_0 : i32
    scf.if %2 {
      %cst_18 = arith.constant 0xFF800000 : f32
      %41 = vector.broadcast %cst_18 : f32 to vector<8x128xf32>
      %c0_19 = arith.constant 0 : index
      %c0_20 = arith.constant 0 : index
      %42 = vector.load %arg7[%c0_19, %c0_20] : memref<8x128xf32, #tpu.memory_space<vmem>>, vector<8x128xf32>
      tpu.vector_store %arg7[%c0_19, %c0_20], %41 {strides = array<i32>} : memref<8x128xf32, #tpu.memory_space<vmem>>, vector<8x128xf32>,
      %cst_21 = arith.constant 0.000000e+00 : f32
      %43 = vector.broadcast %cst_21 : f32 to vector<8x128xf32>
      %c0_22 = arith.constant 0 : index
      %c0_23 = arith.constant 0 : index
      %44 = vector.load %arg8[%c0_22, %c0_23] : memref<8x128xf32, #tpu.memory_space<vmem>>, vector<8x128xf32>
      tpu.vector_store %arg8[%c0_22, %c0_23], %43 {strides = array<i32>} : memref<8x128xf32, #tpu.memory_space<vmem>>, vector<8x128xf32>,
      %cst_24 = arith.constant 0.000000e+00 : f32
      %45 = vector.broadcast %cst_24 : f32 to vector<8x128xf32>
      %c0_25 = arith.constant 0 : index
      %c0_26 = arith.constant 0 : index
      %46 = vector.load %arg9[%c0_25, %c0_26] : memref<8x128xf32, #tpu.memory_space<vmem>>, vector<8x128xf32>
      tpu.vector_store %arg9[%c0_25, %c0_26], %45 {strides = array<i32>} : memref<8x128xf32, #tpu.memory_space<vmem>>, vector<8x128xf32>,
      %cst_27 = arith.constant 0.000000e+00 : f32
      %47 = vector.broadcast %cst_27 : f32 to vector<8x128xf32>
      %c0_28 = arith.constant 0 : index
      %c0_29 = arith.constant 0 : index
      %48 = vector.load %arg10[%c0_28, %c0_29] : memref<8x128xf32, #tpu.memory_space<vmem>>, vector<8x128xf32>
      tpu.vector_store %arg10[%c0_28, %c0_29], %47 {strides = array<i32>} : memref<8x128xf32, #tpu.memory_space<vmem>>, vector<8x128xf32>,
    } else {
    }
    %c128_i32 = arith.constant 128 : i32
    %3 = arith.muli %arg1, %c128_i32 : i32
    %4 = tpu.assume_multiple %3, 128 : i32
    %5 = arith.index_cast %4 : i32 to index
    %c0 = arith.constant 0 : index
    %6 = vector.load %arg3[%5, %c0] : memref<128x128xbf16, #tpu.memory_space<vmem>>, vector<128x128xbf16>
    %c0_1 = arith.constant 0 : index
    %c0_2 = arith.constant 0 : index
    %7 = vector.load %arg2[%c0_1, %c0_2] : memref<8x128xbf16, #tpu.memory_space<vmem>>, vector<8x128xbf16>
    %cst = arith.constant dense<0.000000e+00> : vector<8x128xf32>
    %8 = tpu.matmul %7, %6, %cst {dimension_numbers = #tpu.dot_dimension_numbers<[1], [1], [0], [0], [0, 0, 1, 0], [], []>} : vector<8x128xbf16>, vector<128x128xbf16>, vector<8x128xf32> -> vector<8x128xf32>
    %c128_i32_3 = arith.constant 128 : i32
    %9 = arith.muli %arg1, %c128_i32_3 : i32
    %10 = tpu.iota {dimensions = array<i32: 1>} : vector<1x128xi32>
    %11 = vector.broadcast %9 : i32 to vector<1x128xi32>
    %12 = arith.addi %11, %10 : vector<1x128xi32>
    %c16_i32 = arith.constant 16 : i32
    %13 = vector.broadcast %c16_i32 : i32 to vector<1x128xi32>
    %14 = arith.cmpi sge, %12, %13 : vector<1x128xi32>
    %cst_4 = arith.constant -1.000000e+30 : f32
    %cst_5 = arith.constant 0.000000e+00 : f32
    %15 = vector.broadcast %cst_4 : f32 to vector<1x128xf32>
    %16 = vector.broadcast %cst_5 : f32 to vector<1x128xf32>
    %17 = arith.select %14, %15, %16 : vector<1x128xi1>, vector<1x128xf32>
    %18 = vector.broadcast %17 : vector<1x128xf32> to vector<8x128xf32>
    %19 = arith.addf %8, %18 : vector<8x128xf32>
    %c0_6 = arith.constant 0 : index
    %c0_7 = arith.constant 0 : index
    %20 = vector.load %arg4[%c0_6, %c0_7] : memref<8x1xi32, #tpu.memory_space<vmem>>, vector<8x1xi32>
    %21 = vector.shape_cast %20 : vector<8x1xi32> to vector<8x1xi32>
    %22 = vector.broadcast %21 : vector<8x1xi32> to vector<8x128xi32>
    %c0_8 = arith.constant 0 : index
    %c0_9 = arith.constant 0 : index
    %23 = vector.load %arg5[%c0_8, %c0_9] : memref<1x128xi32, #tpu.memory_space<vmem>>, vector<1x128xi32>
    %c8_i32 = arith.constant 8 : i32
    %24 = arith.muli %arg0, %c8_i32 : i32
    %c1_i32 = arith.constant 1 : i32
    %25 = arith.addi %arg1, %c1_i32 : i32
    %c128_i32_10 = arith.constant 128 : i32
    %26 = arith.muli %25, %c128_i32_10 : i32
    %27 = arith.cmpi slt, %24, %26 : i32
    %c128_i32_11 = arith.constant 128 : i32
    %28 = arith.muli %arg1, %c128_i32_11 : i32
    %c1_i32_12 = arith.constant 1 : i32
    %29 = arith.addi %arg0, %c1_i32_12 : i32
    %c8_i32_13 = arith.constant 8 : i32
    %30 = arith.muli %29, %c8_i32_13 : i32
    %31 = arith.cmpi slt, %28, %30 : i32
    %32 = arith.andi %27, %31 : i1
    %33 = arith.extui %32 : i1 to i32
    %c0_i32_14 = arith.constant 0 : i32
    %34 = arith.cmpi ne, %33, %c0_i32_14 : i32
    scf.if %34 {
      %41 = tpu.iota {dimensions = array<i32: 0>} : vector<8x128xi32>
      %42 = tpu.iota {dimensions = array<i32: 1>} : vector<8x128xi32>
      %43 = arith.subi %41, %42 : vector<8x128xi32>
      %c8_i32_18 = arith.constant 8 : i32
      %44 = arith.muli %arg0, %c8_i32_18 : i32
      %c128_i32_19 = arith.constant 128 : i32
      %45 = arith.muli %arg1, %c128_i32_19 : i32
      %46 = arith.subi %44, %45 : i32
      %47 = vector.broadcast %46 : i32 to vector<8x128xi32>
      %48 = arith.addi %43, %47 : vector<8x128xi32>
      %c0_20 = arith.constant 0 : index
      %c0_21 = arith.constant 0 : index
      %49 = vector.load %arg7[%c0_20, %c0_21] : memref<8x128xf32, #tpu.memory_space<vmem>>, vector<8x128xf32>
      %50 = arith.maximumf %49, %19 : vector<8x128xf32>
      %51 = arith.subf %49, %50 : vector<8x128xf32>
      %52 = math.exp %51 : vector<8x128xf32>
      %c0_22 = arith.constant 0 : index
      %c0_23 = arith.constant 0 : index
      %53 = vector.load %arg8[%c0_22, %c0_23] : memref<8x128xf32, #tpu.memory_space<vmem>>, vector<8x128xf32>
      %54 = arith.mulf %53, %52 : vector<8x128xf32>
      %c0_24 = arith.constant 0 : index
      %c0_25 = arith.constant 0 : index
      %55 = vector.load %arg9[%c0_24, %c0_25] : memref<8x128xf32, #tpu.memory_space<vmem>>, vector<8x128xf32>
      %c0_26 = arith.constant 0 : index
      %c0_27 = arith.constant 0 : index
      %56 = vector.load %arg10[%c0_26, %c0_27] : memref<8x128xf32, #tpu.memory_space<vmem>>, vector<8x128xf32>
      %57 = vector.broadcast %23 : vector<1x128xi32> to vector<8x128xi32>
      %58 = arith.cmpi eq, %22, %57 : vector<8x128xi32>
      %c0_i32_28 = arith.constant 0 : i32
      %59 = vector.broadcast %c0_i32_28 : i32 to vector<8x128xi32>
      %60 = arith.cmpi eq, %48, %59 : vector<8x128xi32>
      %cst_29 = arith.constant -1.000000e+30 : f32
      %61 = vector.broadcast %cst_29 : f32 to vector<8x128xf32>
      %62 = arith.select %60, %61, %19 : vector<8x128xi1>, vector<8x128xf32>
      %cst_30 = arith.constant dense<true> : vector<8x128xi1>
      %63 = arith.xori %60, %cst_30 : vector<8x128xi1>
      %64 = arith.andi %58, %63 : vector<8x128xi1>
      %65 = arith.subf %62, %50 : vector<8x128xf32>
      %66 = math.exp %65 : vector<8x128xf32>
      %67 = arith.addf %54, %66 : vector<8x128xf32>
      %cst_31 = arith.constant 0.000000e+00 : f32
      %68 = vector.broadcast %cst_31 : f32 to vector<8x128xf32>
      %69 = arith.select %64, %62, %68 : vector<8x128xi1>, vector<8x128xf32>
      %70 = arith.addf %55, %69 : vector<8x128xf32>
      %cst_32 = arith.constant 1.000000e+00 : f32
      %cst_33 = arith.constant 0.000000e+00 : f32
      %71 = vector.broadcast %cst_32 : f32 to vector<8x128xf32>
      %72 = vector.broadcast %cst_33 : f32 to vector<8x128xf32>
      %73 = arith.select %64, %71, %72 : vector<8x128xi1>, vector<8x128xf32>
      %74 = arith.addf %56, %73 : vector<8x128xf32>
      %c0_34 = arith.constant 0 : index
      %c0_35 = arith.constant 0 : index
      %75 = vector.load %arg7[%c0_34, %c0_35] : memref<8x128xf32, #tpu.memory_space<vmem>>, vector<8x128xf32>
      tpu.vector_store %arg7[%c0_34, %c0_35], %50 {strides = array<i32>} : memref<8x128xf32, #tpu.memory_space<vmem>>, vector<8x128xf32>,
      %c0_36 = arith.constant 0 : index
      %c0_37 = arith.constant 0 : index
      %76 = vector.load %arg8[%c0_36, %c0_37] : memref<8x128xf32, #tpu.memory_space<vmem>>, vector<8x128xf32>
      tpu.vector_store %arg8[%c0_36, %c0_37], %67 {strides = array<i32>} : memref<8x128xf32, #tpu.memory_space<vmem>>, vector<8x128xf32>,
      %c0_38 = arith.constant 0 : index
      %c0_39 = arith.constant 0 : index
      %77 = vector.load %arg9[%c0_38, %c0_39] : memref<8x128xf32, #tpu.memory_space<vmem>>, vector<8x128xf32>
      tpu.vector_store %arg9[%c0_38, %c0_39], %70 {strides = array<i32>} : memref<8x128xf32, #tpu.memory_space<vmem>>, vector<8x128xf32>,
      %c0_40 = arith.constant 0 : index
      %c0_41 = arith.constant 0 : index
      %78 = vector.load %arg10[%c0_40, %c0_41] : memref<8x128xf32, #tpu.memory_space<vmem>>, vector<8x128xf32>
      tpu.vector_store %arg10[%c0_40, %c0_41], %74 {strides = array<i32>} : memref<8x128xf32, #tpu.memory_space<vmem>>, vector<8x128xf32>,
    } else {
    }
    %true = arith.constant true
    %35 = arith.xori %32, %true : i1
    %36 = arith.extui %35 : i1 to i32
    %c0_i32_15 = arith.constant 0 : i32
    %37 = arith.cmpi ne, %36, %c0_i32_15 : i32
    scf.if %37 {
      %c0_18 = arith.constant 0 : index
      %c0_19 = arith.constant 0 : index
      %41 = vector.load %arg7[%c0_18, %c0_19] : memref<8x128xf32, #tpu.memory_space<vmem>>, vector<8x128xf32>
      %42 = arith.maximumf %41, %19 : vector<8x128xf32>
      %43 = arith.subf %41, %42 : vector<8x128xf32>
      %44 = math.exp %43 : vector<8x128xf32>
      %c0_20 = arith.constant 0 : index
      %c0_21 = arith.constant 0 : index
      %45 = vector.load %arg8[%c0_20, %c0_21] : memref<8x128xf32, #tpu.memory_space<vmem>>, vector<8x128xf32>
      %46 = arith.mulf %45, %44 : vector<8x128xf32>
      %c0_22 = arith.constant 0 : index
      %c0_23 = arith.constant 0 : index
      %47 = vector.load %arg9[%c0_22, %c0_23] : memref<8x128xf32, #tpu.memory_space<vmem>>, vector<8x128xf32>
      %c0_24 = arith.constant 0 : index
      %c0_25 = arith.constant 0 : index
      %48 = vector.load %arg10[%c0_24, %c0_25] : memref<8x128xf32, #tpu.memory_space<vmem>>, vector<8x128xf32>
      %49 = vector.broadcast %23 : vector<1x128xi32> to vector<8x128xi32>
      %50 = arith.cmpi eq, %22, %49 : vector<8x128xi32>
      %51 = arith.subf %19, %42 : vector<8x128xf32>
      %52 = math.exp %51 : vector<8x128xf32>
      %53 = arith.addf %46, %52 : vector<8x128xf32>
      %cst_26 = arith.constant 0.000000e+00 : f32
      %54 = vector.broadcast %cst_26 : f32 to vector<8x128xf32>
      %55 = arith.select %50, %19, %54 : vector<8x128xi1>, vector<8x128xf32>
      %56 = arith.addf %47, %55 : vector<8x128xf32>
      %cst_27 = arith.constant 1.000000e+00 : f32
      %cst_28 = arith.constant 0.000000e+00 : f32
      %57 = vector.broadcast %cst_27 : f32 to vector<8x128xf32>
      %58 = vector.broadcast %cst_28 : f32 to vector<8x128xf32>
      %59 = arith.select %50, %57, %58 : vector<8x128xi1>, vector<8x128xf32>
      %60 = arith.addf %48, %59 : vector<8x128xf32>
      %c0_29 = arith.constant 0 : index
      %c0_30 = arith.constant 0 : index
      %61 = vector.load %arg7[%c0_29, %c0_30] : memref<8x128xf32, #tpu.memory_space<vmem>>, vector<8x128xf32>
      tpu.vector_store %arg7[%c0_29, %c0_30], %42 {strides = array<i32>} : memref<8x128xf32, #tpu.memory_space<vmem>>, vector<8x128xf32>,
      %c0_31 = arith.constant 0 : index
      %c0_32 = arith.constant 0 : index
      %62 = vector.load %arg8[%c0_31, %c0_32] : memref<8x128xf32, #tpu.memory_space<vmem>>, vector<8x128xf32>
      tpu.vector_store %arg8[%c0_31, %c0_32], %53 {strides = array<i32>} : memref<8x128xf32, #tpu.memory_space<vmem>>, vector<8x128xf32>,
      %c0_33 = arith.constant 0 : index
      %c0_34 = arith.constant 0 : index
      %63 = vector.load %arg9[%c0_33, %c0_34] : memref<8x128xf32, #tpu.memory_space<vmem>>, vector<8x128xf32>
      tpu.vector_store %arg9[%c0_33, %c0_34], %56 {strides = array<i32>} : memref<8x128xf32, #tpu.memory_space<vmem>>, vector<8x128xf32>,
      %c0_35 = arith.constant 0 : index
      %c0_36 = arith.constant 0 : index
      %64 = vector.load %arg10[%c0_35, %c0_36] : memref<8x128xf32, #tpu.memory_space<vmem>>, vector<8x128xf32>
      tpu.vector_store %arg10[%c0_35, %c0_36], %60 {strides = array<i32>} : memref<8x128xf32, #tpu.memory_space<vmem>>, vector<8x128xf32>,
    } else {
    }
    %c0_i32_16 = arith.constant 0 : i32
    %38 = arith.cmpi eq, %arg1, %c0_i32_16 : i32
    %39 = arith.extui %38 : i1 to i32
    %c0_i32_17 = arith.constant 0 : i32
    %40 = arith.cmpi ne, %39, %c0_i32_17 : i32
    scf.if %40 {
      %c0_18 = arith.constant 0 : index
      %c0_19 = arith.constant 0 : index
      %41 = vector.load %arg7[%c0_18, %c0_19] : memref<8x128xf32, #tpu.memory_space<vmem>>, vector<8x128xf32>
      %cst_20 = arith.constant dense<0xFF800000> : vector<8xf32>
      %42 = vector.multi_reduction <maximumf>, %41, %cst_20 [1] : vector<8x128xf32> to vector<8xf32>
      %43 = vector.shape_cast %42 : vector<8xf32> to vector<8x1xf32>
      %c0_21 = arith.constant 0 : index
      %c0_22 = arith.constant 0 : index
      %44 = vector.load %arg8[%c0_21, %c0_22] : memref<8x128xf32, #tpu.memory_space<vmem>>, vector<8x128xf32>
      %45 = vector.broadcast %43 : vector<8x1xf32> to vector<8x128xf32>
      %46 = arith.subf %41, %45 : vector<8x128xf32>
      %47 = math.exp %46 : vector<8x128xf32>
      %48 = arith.mulf %44, %47 : vector<8x128xf32>
      %cst_23 = arith.constant dense<0.000000e+00> : vector<8xf32>
      %49 = vector.multi_reduction <add>, %48, %cst_23 [1] : vector<8x128xf32> to vector<8xf32>
      %50 = vector.shape_cast %49 : vector<8xf32> to vector<8x1xf32>
      %c0_24 = arith.constant 0 : index
      %c0_25 = arith.constant 0 : index
      %51 = vector.load %arg9[%c0_24, %c0_25] : memref<8x128xf32, #tpu.memory_space<vmem>>, vector<8x128xf32>
      %cst_26 = arith.constant dense<0.000000e+00> : vector<8xf32>
      %52 = vector.multi_reduction <add>, %51, %cst_26 [1] : vector<8x128xf32> to vector<8xf32>
      %53 = vector.shape_cast %52 : vector<8xf32> to vector<8x1xf32>
      %c0_27 = arith.constant 0 : index
      %c0_28 = arith.constant 0 : index
      %54 = vector.load %arg10[%c0_27, %c0_28] : memref<8x128xf32, #tpu.memory_space<vmem>>, vector<8x128xf32>
      %cst_29 = arith.constant dense<0.000000e+00> : vector<8xf32>
      %55 = vector.multi_reduction <add>, %54, %cst_29 [1] : vector<8x128xf32> to vector<8xf32>
      %56 = vector.shape_cast %55 : vector<8xf32> to vector<8x1xf32>
      %57 = math.log %50 : vector<8x1xf32>
      %58 = arith.addf %43, %57 : vector<8x1xf32>
      %59 = arith.mulf %56, %58 : vector<8x1xf32>
      %60 = arith.subf %53, %59 : vector<8x1xf32>
      %cst_30 = arith.constant 1.000000e+00 : f32
      %61 = vector.broadcast %cst_30 : f32 to vector<8x1xf32>
      %62 = arith.maximumf %56, %61 : vector<8x1xf32>
      %63 = arith.divf %60, %62 : vector<8x1xf32>
      %c8_i32_31 = arith.constant 8 : i32
      %64 = arith.muli %arg0, %c8_i32_31 : i32
      %65 = tpu.iota {dimensions = array<i32: 0>} : vector<8x1xi32>
      %66 = vector.broadcast %64 : i32 to vector<8x1xi32>
      %67 = arith.addi %66, %65 : vector<8x1xi32>
      %cst_32 = arith.constant 0.000000e+00 : f32
      %68 = vector.broadcast %cst_32 : f32 to vector<8x1xf32>
      %69 = arith.cmpf ogt, %56, %68 : vector<8x1xf32>
      %c16_i32_33 = arith.constant 16 : i32
      %70 = vector.broadcast %c16_i32_33 : i32 to vector<8x1xi32>
      %71 = arith.cmpi slt, %67, %70 : vector<8x1xi32>
      %72 = arith.andi %69, %71 : vector<8x1xi1>
      %cst_34 = arith.constant 0.000000e+00 : f32
      %73 = vector.broadcast %cst_34 : f32 to vector<8x1xf32>
      %74 = arith.select %72, %63, %73 : vector<8x1xi1>, vector<8x1xf32>
      %cst_35 = arith.constant dense<0.000000e+00> : vector<1xf32>
      %75 = vector.multi_reduction <add>, %74, %cst_35 [0] : vector<8x1xf32> to vector<1xf32>
      %76 = vector.shape_cast %75 : vector<1xf32> to vector<1x1xf32>
      %77 = vector.shape_cast %76 : vector<1x1xf32> to vector<1x1x1xf32>
      %78 = vector.broadcast %77 : vector<1x1x1xf32> to vector<1x8x128xf32>
      %c0_36 = arith.constant 0 : index
      %c0_37 = arith.constant 0 : index
      %c0_38 = arith.constant 0 : index
      %79 = vector.load %arg6[%c0_36, %c0_37, %c0_38] : memref<1x8x128xf32, #tpu.memory_space<vmem>>, vector<1x8x128xf32>
      tpu.vector_store %arg6[%c0_36, %c0_37, %c0_38], %78 {strides = array<i32>} : memref<1x8x128xf32, #tpu.memory_space<vmem>>, vector<1x8x128xf32>,
    } else {
    }
    return
  }
  func.func @transform_0(%arg0: i32, %arg1: i32) -> (i32, i32) {
    %c0_i32 = arith.constant 0 : i32
    %c0_i32_0 = arith.constant 0 : i32
    return %arg0, %c0_i32 : i32, i32
  }
  func.func @transform_1(%arg0: i32, %arg1: i32) -> (i32, i32) {
    %c0_i32 = arith.constant 0 : i32
    %c0_i32_0 = arith.constant 0 : i32
    %c0_i32_1 = arith.constant 0 : i32
    return %c0_i32, %c0_i32_0 : i32, i32
  }
  func.func @transform_2(%arg0: i32, %arg1: i32) -> (i32, i32) {
    %c0_i32 = arith.constant 0 : i32
    %c0_i32_0 = arith.constant 0 : i32
    return %arg0, %c0_i32 : i32, i32
  }
  func.func @transform_3(%arg0: i32, %arg1: i32) -> (i32, i32) {
    %c0_i32 = arith.constant 0 : i32
    %c0_i32_0 = arith.constant 0 : i32
    return %c0_i32, %arg1 : i32, i32
  }
  func.func @transform_4(%arg0: i32, %arg1: i32) -> (i32, i32, i32) {
    %c0_i32 = arith.constant 0 : i32
    %c0_i32_0 = arith.constant 0 : i32
    %c0_i32_1 = arith.constant 0 : i32
    return %arg0, %c0_i32, %c0_i32_0 : i32, i32, i32
  }
}

</mosaic_0001>

<bundles_post_ra>
// kernel: tpu_custom_call.1
= control target key start
LH: loop header
LB: loop body
LE: loop exit
PB: predicated region body
PF: predicated region fallthrough
CT: control target
= control target key end

     0   :  { %9 = vsyncpa [#allocation7], 0  ;;  %s1253_s0 = inlined_call_operand.hbm [shape: bf16[128,128], index: 0, kind: input, shape index: {}]   ;;  %s1254_s1 = inlined_call_operand.hbm [shape: bf16[128,128], index: 1, kind: input, shape index: {}]   ;;  %s1255_s2 = inlined_call_operand.vmem [shape: s32[16,1], index: 2, kind: input, shape index: {}]   ;;  %s1256_s3 = inlined_call_operand.vmem [shape: s32[1,128], index: 3, kind: input, shape index: {}]   ;;  %s1257_s4 = inlined_call_operand.hbm [shape: f32[2,8,128], index: 4, kind: output, shape index: {}]  }
   0x1   :  { %11 = vsyncpa [#allocation7 + $0x1], 0 }
   0x2   :  { %12 = vsyncpa [#allocation10], 0 }
   0x3   :  { %13 = vsyncpa [#allocation8], 0 }
   0x4   :  { %15 = vsyncpa [#allocation8 + $0x1], 0  ;;  %s994_s15 = smov 0   ;;  %s996_s16 = smov 0  }
   0x5   :  { %s998_s17 = smov 0   ;;  %s1000_s18 = smov 0  }
   0x6   :  { %s1002_s19 = smov 0   ;;  %s1004_s20 = smov 0  }
   0x7 LB: > { %s647_s21 = sadd.s32 4294967295, %s955_s20   ;;  %s648_s22 = sadd.s32 4294967294, %s955_s20   ;;  %s955_s20 = sphi %s1004_s20, %s21_s20   ;;  %s951_s19 = sphi %s1002_s19, %s1282_s19   ;;  %s947_s18 = sphi %s1000_s18, %s1281_s18   ;;  %s943_s17 = sphi %s998_s17, %s1280_s17   ;;  %s939_s16 = sphi %s996_s16, %s1279_s16   ;;  %s935_s15 = sphi %s994_s15, %s1278_s15  }
   0x8   : > { %p53_p0 = scmp.ne.s32.totalorder %s939_s16, %s935_s15  ;;  %p1028_p1 = scmp.eq.s32.totalorder %s647_s21, 0 }
   0x9   : > { %p1032_p2 = scmp.eq.s32.totalorder %s647_s21, 1  ;;  %p156_p3 = scmp.eq.s32.totalorder %s648_s22, 1 }
   0xa   : > { %s1262_s23 = scalar_select %p1028_p1, 1, 0 }
   0xb   : > { %s1263_s24 = scalar_select %p1032_p2, 1, 0 }
   0xc   : > { %p1038_p4 = por %p1028_p1, %p53_p0  ;;  %p649_p5 = scmp.ge.s32.totalorder %s955_s20, 1 }
   0xd   : > { %p1043_p6 = por %p156_p3, %p53_p0  ;;  %p163_p7 = scmp.lt.s32.totalorder %s955_s20, 3 }
   0xe   : > { %s1264_s25 = scalar_select %p1038_p4, 1, 0 }
   0xf   : > { %s1265_s26 = scalar_select %p1043_p6, 1, 0 }
  0x10   : > { %p1048_p8 = pnand %p649_p5, %p163_p7  ;;  %s957_s28 = smov [#allocation9]  }
  0x11   : > { %s175_s29 = sshll.u32 %s957_s28, 4  ;;  %s33_s5 = sadd.s32 1, %s951_s19  ;;  %s176_s29 = int_to_ptr.vmem [resolvable:$true] %s175_s29 }
  0x12   : > { %s1266_s27 = scalar_select %p1048_p8, 1, 0 }
  0x13   : > { %p714_p9 = pneg %p1048_p8  ;;  %s811_s8 = scalar_lea.hbm %s1254_s1, 1024 }
  0x14   : > { %p812_p12 = scmp.ne.s32.totalorder %s1254_s1, %s811_s8  ;;  %p818_p5 = scmp.lt.u32.totalorder %s811_s8, %s1254_s1 }
  0x15   : > { %p1057_p11 = pnand %p714_p9, %p1028_p1 }
  0x17   : > { %p813_p13 = pneg %p1057_p11 }
  0x19   : > { %p814_p0 = pnand %p813_p13, %p812_p12 }
  0x1b   : > { %p815_p3 = pneg %p814_p0 }
  0x1d   : > { %p820_p7 = pnand %p818_p5, %p815_p3 }
  0x1f   : > { %823 = shalt.err (!%p820_p7)
}
  0x20   : > { %s824_s13 = scalar_lea.vmem %s176_s29, 1024  ;;  %p832_p1 = scmp.lt.s32.totalorder %s176_s29, %s176_s29 }
  0x21   : > { %p825_p9 = scmp.ne.s32.totalorder %s176_s29, %s824_s13  ;;  %p833_p4 = scmp.lt.s32.totalorder %s824_s13, %s824_s13 }
  0x23   : > { %p827_p10 = pnand %p825_p9, %p813_p13  ;;  %p834_p8 = por %p833_p4, %p832_p1 }
  0x25   : > { %p828_p6 = pneg %p827_p10 }
  0x27   : > { %p835_p2 = pnand %p834_p8, %p828_p6 }
  0x29   : > { %838 = shalt.err (!%p835_p2)
}
  0x2a   : > { %s958_s14 = smov 64   ;;  %s959_s21 = smov 4  }
  0x2b   : > { %717 = dma.hbm_to_vmem [thread:$0]  (!%p1057_p11), %s1254_s1, 1024, %s176_s29, [#allocation10], %s958_s14, %s958_s14, %s959_s21  }
  0x2c   : > { %p35_p1 = scmp.ge.s32.totalorder %s33_s5, 2  ;;  %s40_s6 = sadd.s32 1, %s943_s17 }
  0x2d   : > { %p47_p2 = scmp.ne.s32.totalorder %s943_s17, %s939_s16  ;;  %p48_p4 = scmp.eq.s32.totalorder %s955_s20, 0 }
  0x2e   : > { %s1284_s5 = smov (%p35_p1, %s33_s5), 0  ;;  %p1269_p8 = scmp.ne.s32.totalorder %s1263_s24, 0 }
  0x2f   : > { %p1084_p6 = por %p48_p4, %p47_p2  ;;  %s37_s30 = ssub.s32 %s951_s19, %s1284_s5 }
  0x30   : > { %p1090_p10 = por %p1269_p8, %p47_p2  ;;  %p727_p12 = scmp.lt.s32.totalorder %s955_s20, 2 }
  0x31   : > { %p38_p11 = scmp.eq.s32.totalorder %s37_s30, 0  ;;  %s195_s29 = sand.u32 1, %s943_s17  }
  0x32   : > { %s653_s9 = sshll.u32 %s195_s29, 2  ;;  %s654_s11 = sshll.u32 %s951_s19, 6 }
  0x33   : > { %s1099_s10 = scalar_select %p38_p11, %s943_s17, %s40_s6  }
  0x34   : > { %s1105_s14 = scalar_lea.hbm %s1253_s0, %s654_s11  ;;  %s199_s24 = scalar_lea.vmem [#allocation6], %s653_s9 }
  0x35   : > { %s206_s21 = sshll.u32 %s199_s24, 4  ;;  %p1111_p13 = pnand %p727_p12, %p1084_p6  ;;  %s1107_s21 = int_to_ptr.vmem [resolvable:$true] %s206_s21 }
  0x36   : > { %s196_s28 = scalar_lea.sflag [#allocation7], %s195_s29  ;;  %s839_s6 = scalar_lea.hbm %s1105_s14, 64 }
  0x37   : > { %p840_p0 = scmp.ne.s32.totalorder %s1105_s14, %s839_s6  ;;  %p841_p3 = pneg %p1111_p13 }
  0x38   : > { %s844_s11 = scalar_lea.hbm %s1253_s0, 1024  ;;  %p845_p9 = scmp.lt.u32.totalorder %s1105_s14, %s1253_s0 }
  0x39   : > { %p842_p5 = pnand %p841_p3, %p840_p0  ;;  %p846_p1 = scmp.lt.u32.totalorder %s844_s11, %s839_s6 }
  0x3a   : > { %p848_p4 = scmp.lt.u32.totalorder %s839_s6, %s1105_s14 }
  0x3b   : > { %p843_p7 = pneg %p842_p5  ;;  %p847_p2 = por %p846_p1, %p845_p9 }
  0x3d   : > { %p849_p6 = por %p848_p4, %p847_p2 }
  0x3f   : > { %p850_p8 = pnand %p849_p6, %p843_p7 }
  0x41   : > { %853 = shalt.err (!%p850_p8)
}
  0x42   : > { %s854_s29 = scalar_lea.vmem %s1107_s21, 64  ;;  %s960_s13 = smov [#allocation6]  }
  0x43   : > { %p855_p12 = scmp.ne.s32.totalorder %s1107_s21, %s854_s29  ;;  %s859_s24 = sshll.u32 %s960_s13, 4  ;;  %s860_s24 = int_to_ptr.vmem [resolvable:$false] %s859_s24 }
  0x44   : > { %s861_s30 = scalar_lea.vmem %s860_s24, 128  ;;  %p862_p5 = scmp.lt.s32.totalorder %s1107_s21, %s860_s24 }
  0x45   : > { %p857_p11 = pnand %p855_p12, %p841_p3  ;;  %p863_p9 = scmp.lt.s32.totalorder %s861_s30, %s854_s29 }
  0x47   : > { %p858_p0 = pneg %p857_p11  ;;  %p864_p1 = por %p863_p9, %p862_p5 }
  0x49   : > { %p865_p2 = pnand %p864_p1, %p858_p0 }
  0x4b   : > { %868 = shalt.err (!%p865_p2)
}
  0x4c   : > { %721 = dma.hbm_to_vmem [thread:$0]  (!%p1111_p13), %s1105_s14, 64, %s1107_s21, %s196_s28  }
  0x4d   : > { %p1272_p7 = scmp.ne.s32.totalorder %s1266_s27, 0 }
  0x4e   : > { %s1143_s6 = sand.u32 (!%p1272_p7), 1, %s939_s16   ;;  %p1273_p3 = scmp.ne.s32.totalorder (!%p1272_p7), %s1264_s25, 0 }
  0x4f   : > { %222 = sbr.rel (%p1272_p7) target bundleno = 768 (0x300), region = 36  ;;  %s656_s9 = sshll.u32 (!%p1272_p7), %s1143_s6, 2 }
  0x50   : > { %s225_s11 = scalar_lea.sflag (!%p1272_p7), [#allocation7], %s1143_s6  ;;  %s1147_s7 = scalar_lea.vmem (!%p1272_p7), [#allocation6], %s656_s9 }
  0x56   : > { %922 = dma.done.wait (%p1273_p3), %s225_s11, 64  }
  0x57   : > { %924 = vsyncadd (%p1273_p3), %s225_s11, 4294967232  ;;  %p1274_p13 = scmp.ne.s32.totalorder %s1262_s23, 0 }
  0x59   : > { %926 = dma.done.wait (%p1274_p13), [#allocation10], 1024  }
  0x5a   : > { %928 = vsyncadd (%p1274_p13), [#allocation10], 4294966272  ;;  %s658_s27 = sshll.u32 %s1143_s6, 3  ;;  %v961_v0 = vmov -inf   ;;  %v962_v1 = vmov 0.0   ;;  %vm963_vm0 = vmmov 0   ;;  %v302_v15 = vlaneseq }
  0x5b   : > { %276 = vst [vmem:[#allocation2] sm:$0xff] %v961_v0  ;;  %277 = vst [vmem:[#allocation3] sm:$0xff] %v962_v1  ;;  %686 = vmatprep.subr.bf16.mxu0 %v962_v1  ;;  %702 = vmatprep.mubr.msk.bf16.mxu0 %vm963_vm0, %v962_v1  ;;  %p264_p4 = scmp.lt.s32.totalorder %s947_s18, 1  ;;  %v964_v2 = vmov 0   ;;  %v1163_v3 = vld [vmem:[%s1256_s3] sm:$0x1] }
  0x5c   : > { %278 = vst [vmem:[#allocation4] sm:$0xff] %v962_v1  ;;  %279 = vst [vmem:[#allocation5] sm:$0xff] %v962_v1  ;;  %788 = vset.pattern.permute.xlu0 %v964_v2  ;;  %v789_v4 = vld [vmem:[#allocation9] sm:$0xff]   ;;  %v790_v5 = vld [vmem:[#allocation9 + $0x8] sm:$0xff]   ;;  %s1170_s29 = sshll.u32 %s947_s18, 3  ;;  %v303_v16 = vand.u32 127, %v302_v15 }
  0x5d   : > { %s265_s25 = scalar_select %p264_p4, %s947_s18, 1  ;;  %687 = vmatpush3.bf16.xpose.msra.mxu0 %v789_v4  ;;  %v791_v7 = vld [vmem:[#allocation9 + $0x10] sm:$0xff]   ;;  %v792_v8 = vld [vmem:[#allocation9 + $0x18] sm:$0xff]   ;;  %v793_v9 = vld [vmem:[#allocation9 + $0x20] sm:$0xff]  }
  0x5e   : > { %688 = vmatprep.subr.bf16.mxu0 %v962_v1  ;;  %v794_v10 = vld [vmem:[#allocation9 + $0x28] sm:$0xff]   ;;  %v795_v11 = vld [vmem:[#allocation9 + $0x30] sm:$0xff]   ;;  %v796_v12 = vld [vmem:[#allocation9 + $0x38] sm:$0xff]   ;;  %s676_s13 = sadd.s32 8, %s1170_s29  ;;  %p404_p6 = scmp.lt.s32.totalorder %s1170_s29, 128  ;;  %vm306_vm1 = vcmp.ge.s32.totalorder %v303_v16, 16 }
  0x5f   : > { %s659_s21 = sshll.u32 %s265_s25, 3  ;;  %v301_v13 = vld [vmem:[%s1147_s7] sm:$0xf]  ;;  %p670_p8 = scmp.gt.s32.totalorder %s676_s13, 0  ;;  %v307_v17 = vsel %vm306_vm1, -1e+30, %v962_v1 }
  0x60   : > { %s267_s12 = scalar_lea.vmem %s1255_s2, %s659_s21  ;;  %s1183_s30 = scalar_lea.vmem [#allocation11], %s658_s27 }
  0x61   : > { %v396_v6 = vld [vmem:[%s267_s12] sm:$0xff]  ;;  %p1176_p12 = pnand %p670_p8, %p404_p6 }
  0x62   : > { %398 = vperm.xlu0 %788, %v396_v6   ;;  %v413_v23 = vshrl.u32 (!%p1176_p12), %v302_v15, 7  ;;  %v418_v24 = vld [vmem:[#allocation2] sm:$0xff] (!%p1176_p12)  ;;  %v416_v25 = vstv (!%p1176_p12), %s1170_s29  ;;  %vm965_vm4 = vmmov (!%p1176_p12), 1   ;;  %v966_v38 = vmov (!%p1176_p12), 0.0   ;;  %v423_v43 = vld [vmem:[#allocation3] sm:$0xff] (!%p1176_p12) }
  0x63   : > { %v425_v34 = vld [vmem:[#allocation4] sm:$0xff] (!%p1176_p12)  ;;  %v426_v35 = vld [vmem:[#allocation5] sm:$0xff] (!%p1176_p12) }
  0x64   : > { %v414_v27 = vsub.s32 (!%p1176_p12), %v413_v23, %v303_v16  ;;  %v429_v28 = vsub.s32 (!%p1176_p12), 0, %v413_v23 }
  0x65   : > { %689 = vmatpush3.bf16.xpose.msra.mxu0 %v790_v5 }
  0x66   : > { %690 = vmatprep.subr.bf16.mxu0 %v962_v1  ;;  %v417_v30 = vadd.s32 (!%p1176_p12), %v416_v25, %v414_v27  ;;  %v430_v31 = vrot.slane (!%p1176_p12), %v1163_v3, %v429_v28 }
  0x68   : > { %vm432_vm2 = vcmp.eq.s32.totalorder (!%p1176_p12), %v417_v30, 0 }
  0x69   : > { %vm434_vm5 = vmxor (!%p1176_p12), %vm432_vm2, %vm965_vm4 }
  0x6d   : > { %691 = vmatpush3.bf16.xpose.msra.mxu0 %v791_v7 }
  0x6e   : > { %692 = vmatprep.subr.bf16.mxu0 %v962_v1 }
  0x75   : > { %693 = vmatpush3.bf16.xpose.msra.mxu0 %v792_v8 }
  0x76   : > { %694 = vmatprep.subr.bf16.mxu0 %v962_v1 }
  0x7d   : > { %695 = vmatpush3.bf16.xpose.msra.mxu0 %v793_v9 }
  0x7e   : > { %696 = vmatprep.subr.bf16.mxu0 %v962_v1 }
  0x85   : > { %697 = vmatpush3.bf16.xpose.msra.mxu0 %v794_v10 }
  0x86   : > { %698 = vmatprep.subr.bf16.mxu0 %v962_v1 }
  0x8d   : > { %699 = vmatpush3.bf16.xpose.msra.mxu0 %v795_v11 }
  0x8e   : > { %700 = vmatprep.subr.bf16.mxu0 %v962_v1 }
  0x95   : > { %701 = vmatpush3.bf16.xpose.msra.mxu0 %v796_v12 }
  0x9c   : > { %703 = vmatmul.mubr.bf16.vlgmr.msra.gmra.mrb[0].mxu0 %v301_v13 }
  0xe1   : > { %v1174_v14 = vpop.permute.xlu0 %398 }
  0xe2   : > { %vm431_vm3 = vcmp.eq.s32.totalorder (!%p1176_p12), %v1174_v14, %v430_v31 }
  0xe3   : > { %vm435_vm6 = vmand (!%p1176_p12), %vm431_vm3, %vm434_vm5 }
  0xe4   : > { %v442_v39 = vsel (!%p1176_p12), %vm435_vm6, 1.0, %v966_v38 }
  0xe5   : > { %v443_v42 = vadd.f32 (!%p1176_p12), %v442_v39, %v426_v35 }
  0xe7   : > { %447 = vst [vmem:[#allocation5] sm:$0xff] (!%p1176_p12), %v443_v42 }
 0x16c   : > { %411 = sbr.rel (%p1176_p12) target bundleno = 392 (0x188), region = 52 }
 0x16f   : > { %v390_v18 = vpop.f32.mrb[0].mxu0 }
 0x170   : > { %v391_v19 = vadd.f32 %v390_v18, %v307_v17  ;;  %v704_v20 = vpop.f32.mrb[1].mxu0 }
 0x171   : > { %v393_v21 = vpop.f32.mrb[2].mxu0 }
 0x172   : > { %v705_v22 = vpop.f32.mrb[3].mxu0  ;;  %v419_v26 = vmax.f32 (!%p1176_p12), %v418_v24, %v391_v19  ;;  %v433_v33 = vsel (!%p1176_p12), %vm432_vm2, -1e+30, %v391_v19 }
 0x173   : > { %v440_v37 = vsel %vm435_vm6, %v433_v33, 0.0 }
 0x174   : > { %v420_v29 = vsub.f32 %v418_v24, %v419_v26  ;;  %444 = vst [vmem:[#allocation2] sm:$0xff] %v419_v26  ;;  %v436_v36 = vsub.f32 %v433_v33, %v419_v26  ;;  %v441_v41 = vadd.f32 %v440_v37, %v425_v34 }
 0x176   : > { %v421_v32 = vmul.f32 1.442695, %v420_v29  ;;  %v437_v40 = vmul.f32 1.442695, %v436_v36  ;;  %446 = vst [vmem:[#allocation4] sm:$0xff] %v441_v41 }
 0x178   : > { %797 = vpow2.f32 %v421_v32 }
 0x179   : > { %799 = vpow2.f32 %v437_v40 }
 0x182   : > { %v798_v44 = vpop.eup %797 }
 0x183   : > { %v424_v45 = vmul.f32 %v798_v44, %v423_v43  ;;  %v800_v46 = vpop.eup %799 }
 0x185   : > { %v439_v47 = vadd.f32 %v800_v46, %v424_v45 }
 0x187   : > { %445 = vst [vmem:[#allocation3] sm:$0xff] %v439_v47 }
 0x188 PF: > { %450 = sbr.rel (!%p1176_p12) target bundleno = 415 (0x19f), region = 56  ;;  %v451_v48 = vld [vmem:[#allocation2] sm:$0xff] (%p1176_p12)  ;;  %v461_v49 = vshrl.u32 (%p1176_p12), %v302_v15, 7  ;;  %v458_v57 = vld [vmem:[#allocation4] sm:$0xff] (%p1176_p12)  ;;  %v459_v58 = vld [vmem:[#allocation5] sm:$0xff] (%p1176_p12)  ;;  %v967_v60 = vmov (%p1176_p12), 0.0  }
 0x189   : > { %v452_v50 = vmax.f32 (%p1176_p12), %v451_v48, %v391_v19 }
 0x18a   : > { %v462_v51 = vsub.s32 (%p1176_p12), 0, %v461_v49 }
 0x18b   : > { %v453_v52 = vsub.f32 (%p1176_p12), %v451_v48, %v452_v50  ;;  %v465_v53 = vsub.f32 (%p1176_p12), %v391_v19, %v452_v50  ;;  %473 = vst [vmem:[#allocation2] sm:$0xff] (%p1176_p12), %v452_v50 }
 0x18c   : > { %v463_v54 = vrot.slane (%p1176_p12), %v1163_v3, %v462_v51 }
 0x18d   : > { %v454_v55 = vmul.f32 (%p1176_p12), 1.442695, %v453_v52  ;;  %v466_v56 = vmul.f32 (%p1176_p12), 1.442695, %v465_v53 }
 0x18e   : > { %vm464_vm7 = vcmp.eq.s32.totalorder (%p1176_p12), %v1174_v14, %v463_v54  ;;  %v456_v0 = vld [vmem:[#allocation3] sm:$0xff] (%p1176_p12) }
 0x18f   : > { %801 = vpow2.f32 %v454_v55  ;;  %v469_v59 = vsel %vm464_vm7, %v391_v19, 0.0  ;;  %v471_v61 = vsel %vm464_vm7, 1.0, %v967_v60 }
 0x190   : > { %803 = vpow2.f32 %v466_v56  ;;  %v470_v62 = vadd.f32 %v469_v59, %v458_v57  ;;  %v472_v63 = vadd.f32 %v471_v61, %v459_v58 }
 0x192   : > { %475 = vst [vmem:[#allocation4] sm:$0xff] %v470_v62  ;;  %476 = vst [vmem:[#allocation5] sm:$0xff] %v472_v63 }
 0x199   : > { %v802_v1 = vpop.eup %801 }
 0x19a   : > { %v804_v2 = vpop.eup %803  ;;  %v457_v4 = vmul.f32 %v802_v1, %v456_v0 }
 0x19c   : > { %v468_v3 = vadd.f32 %v804_v2, %v457_v4 }
 0x19e   : > { %474 = vst [vmem:[#allocation3] sm:$0xff] %v468_v3 }
 0x19f PF: > { %v493_v6 = vld [vmem:[#allocation5] sm:$0xff]  ;;  %v490_v7 = vld [vmem:[#allocation4] sm:$0xff]  ;;  %v505_v18 = vshrl.u32 %v302_v15, 7  ;;  %v506_v20 = vstv %s1170_s29  ;;  %s672_s9 = sshll.u32 %s947_s18, 7  ;;  %s533_s11 = sshll.u32 %s1183_s30, 4  ;;  %s1205_s11 = int_to_ptr.vmem [resolvable:$true] %s533_s11 }
 0x1a0   : > { %494 = vadd.xlane.f32.xlu1 %v493_v6  ;;  %s1203_s25 = scalar_lea.hbm %s1257_s4, %s672_s9  ;;  %s520_s14 = scalar_lea.sflag [#allocation8], %s1143_s6 }
 0x1a1   : > { %v507_v22 = vadd.s32 %v506_v20, %v505_v18  ;;  %s869_s23 = scalar_lea.vmem %s1205_s11, 128  ;;  %s968_s18 = smov [#allocation11]  }
 0x1a2   : > { %v480_v5 = vld [vmem:[#allocation2] sm:$0xff]  ;;  %p870_p11 = scmp.ne.s32.totalorder %s1205_s11, %s869_s23  ;;  %s873_s21 = sshll.u32 %s968_s18, 4  ;;  %s874_s21 = int_to_ptr.vmem [resolvable:$false] %s873_s21 }
 0x1a3   : > { %481 = vmax.xlane.f32.xlu0 %v480_v5  ;;  %vm509_vm8 = vcmp.lt.s32.totalorder %v507_v22, 16  ;;  %s875_s22 = scalar_lea.vmem %s874_s21, 256  ;;  %p876_p9 = scmp.lt.s32.totalorder %s1205_s11, %s874_s21 }
 0x1a4   : > { %491 = vadd.xlane.f32.xlu1 %v490_v7  ;;  %p871_p0 = pnand %p870_p11, %p1090_p10  ;;  %p877_p1 = scmp.lt.s32.totalorder %s875_s22, %s869_s23 }
 0x1a5   : > { %v483_v11 = vld [vmem:[#allocation3] sm:$0xff] }
 0x1a6   : > { %p872_p5 = pneg %p871_p0  ;;  %p878_p2 = por %p877_p1, %p876_p9 }
 0x1a8   : > { %p879_p7 = pnand %p878_p2, %p872_p5 }
 0x22d   : > { %v495_v16 = vpop.xlane.xlu1 %494 }
 0x22e   : > { %v501_v17 = vmax.f32 %v495_v16, 1.0  ;;  %vm508_vm9 = vcmp.gt.f32.partialorder %v495_v16, 0.0 }
 0x22f   : > { %vm510_vm10 = vmand %vm508_vm9, %vm509_vm8 }
 0x230   : > { %v482_v8 = vpop.xlane.xlu0 %481 }
 0x231   : > { %v484_v9 = vsub.f32 %v480_v5, %v482_v8  ;;  %v492_v24 = vpop.xlane.xlu1 %491 }
 0x233   : > { %v485_v10 = vmul.f32 1.442695, %v484_v9 }
 0x235   : > { %805 = vpow2.f32 %v485_v10 }
 0x23f   : > { %v806_v12 = vpop.eup %805 }
 0x240   : > { %v487_v13 = vmul.f32 %v806_v12, %v483_v11 }
 0x242   : > { %488 = vadd.xlane.f32.xlu0 %v487_v13 }
 0x2cf   : > { %v489_v14 = vpop.xlane.xlu0 %488 }
 0x2d0   : > { %807 = vlog2.f32 %v489_v14 }
 0x2d1   : > { %809 = vrcp.f32 %v501_v17 }
 0x2da   : > { %v808_v19 = vpop.eup %807 }
 0x2db   : > { %v497_v21 = vmul.f32 0.6931472, %v808_v19  ;;  %v810_v26 = vpop.eup %809 }
 0x2dd   : > { %v498_v23 = vadd.f32 %v497_v21, %v482_v8 }
 0x2df   : > { %v499_v25 = vmul.f32 %v498_v23, %v495_v16 }
 0x2e1   : > { %v500_v27 = vsub.f32 %v492_v24, %v499_v25 }
 0x2e3   : > { %v503_v28 = vmul.f32 %v810_v26, %v500_v27 }
 0x2e5   : > { %v511_v29 = vsel %vm510_vm10, %v503_v28, 0.0 }
 0x2e6   : > { %v512_v15 = vrot.slane %v511_v29, 4 }
 0x2e8   : > { %v513_v30 = vadd.f32 %v512_v15, %v511_v29 }
 0x2ea   : > { %v514_v31 = vrot.slane %v513_v30, 2 }
 0x2ec   : > { %v515_v32 = vadd.f32 %v514_v31, %v513_v30 }
 0x2ee   : > { %v516_v33 = vrot.slane %v515_v32, 1 }
 0x2f0   : > { %v517_v34 = vadd.f32 %v516_v33, %v515_v32 }
 0x2f2   : > { %518 = vst [vmem:[%s1183_s30] sm:$0xff] %v517_v34 }
 0x2f3   : > { %882 = shalt.err (!%p879_p7)
}
 0x2f4   : > { %s883_s6 = scalar_lea.hbm %s1203_s25, 128  ;;  %s887_s29 = scalar_lea.hbm %s1257_s4, 256 }
 0x2f5   : > { %p884_p3 = scmp.ne.s32.totalorder %s1203_s25, %s883_s6  ;;  %p888_p6 = scmp.lt.u32.totalorder %s1203_s25, %s1257_s4 }
 0x2f6   : > { %p889_p8 = scmp.lt.u32.totalorder %s887_s29, %s883_s6  ;;  %p891_p11 = scmp.lt.u32.totalorder %s883_s6, %s1203_s25 }
 0x2f7   : > { %p885_p13 = pnand %p884_p3, %p1090_p10 }
 0x2f8   : > { %p890_p12 = por %p889_p8, %p888_p6 }
 0x2f9   : > { %p886_p4 = pneg %p885_p13 }
 0x2fa   : > { %p892_p0 = por %p891_p11, %p890_p12 }
 0x2fc   : > { %p893_p5 = pnand %p892_p0, %p886_p4 }
 0x2fe   : > { %896 = shalt.err (!%p893_p5)
}
 0x2ff   : > { %712 = dma.vmem_to_hbm [thread:$0]  (%p1090_p10), %s1205_s11, 128, %s1203_s25, %s520_s14  }
 0x300 PF: > { %s545_s30 = sand.u32 1, %s935_s15   ;;  %p1276_p9 = scmp.ne.s32.totalorder %s1265_s26, 0 }
 0x301   : > { %p1277_p1 = scmp.ge.s32.totalorder %s955_s20, 2  ;;  %s546_s9 = scalar_lea.sflag [#allocation8], %s545_s30 }
 0x303   : > { %p723_p2 = pnand %p1277_p1, %p1276_p9 }
 0x305   : > { %930 = dma.done.wait (!%p723_p2), %s546_s9, 128  }
 0x306   : > { %932 = vsyncadd (!%p723_p2), %s546_s9, 4294967168  ;;  %s21_s20 = sadd.s32 1, %s955_s20   ;;  %s1278_s15 = smov %s939_s16 }
 0x307   : > { %p18_p7 = scmp.ge.s32.totalorder %s21_s20, 4   ;;  %s1279_s16 = smov %s943_s17 }
 0x308   : > { %s1280_s17 = smov %s1099_s10  ;;  %s1281_s18 = smov %s951_s19 }
 0x309   : > { %s1282_s19 = smov %s1284_s5  ;;  %20 = sbr.rel (!%p18_p7) target bundleno = 7 (0x7), region = 108 }
 0x310   :  { %551 = vsyncpa [#allocation7], 1 }
 0x311   :  { %553 = vsyncpa [#allocation7 + $0x1], 1 }
 0x312   :  { %554 = vsyncpa [#allocation10], 1 }
 0x313   :  { %555 = vsyncpa [#allocation8], 1 }
 0x314   :  { %557 = vsyncpa [#allocation8 + $0x1], 1 }

</bundles_post_ra>
